<compile_context>
chip_gen: v7x
topology: tpu7x:2x2x1
jax: 0.10.0
libtpu: 0.0.40
codegen_flags: <defaults>
</compile_context>

<pallas_src>
import jax
import jax.numpy as jnp
from jax.experimental import pallas as pl
from jax.experimental.pallas import tpu as pltpu


def _round_up(x, m):
    return ((x + m - 1) // m) * m


# ---------------------------------------------------------------------------
# Kernels
# ---------------------------------------------------------------------------
def _packed_linear_kernel(x_ref, w_ref, b_ref, o_ref):
    """o = x @ w + b for one batch tile.
    x:(TB,Fin) bf16, w:(Fin,Np) bf16, b:(1,Np) f32, o:(TB,Np) f32 (Np % 128 == 0)."""
    acc = jnp.dot(x_ref[...], w_ref[...], preferred_element_type=jnp.float32)
    o_ref[...] = (acc + b_ref[...]).astype(o_ref.dtype)


def _two_layer_kernel(x_ref, w1_ref, b1_ref, w2_ref, b2_ref, o_ref):
    """o = tanh(x @ w1 + b1) @ w2 + b2, fully fused; hidden h stays in VMEM."""
    h = jnp.dot(x_ref[...], w1_ref[...], preferred_element_type=jnp.float32)
    h = jnp.tanh(h + b1_ref[...])                       # f32 bias + tanh (EUP)
    acc = jnp.dot(h.astype(w2_ref.dtype), w2_ref[...],
                  preferred_element_type=jnp.float32)
    o_ref[...] = (acc + b2_ref[...]).astype(o_ref.dtype)


# ---------------------------------------------------------------------------
# Wrappers
# ---------------------------------------------------------------------------
def _batch_tiling(batch):
    bp8 = _round_up(max(batch, 1), 8)   # pad to sublane multiple
    tb = min(512, bp8)                  # ~512-row tiles hit HBM roofline
    bp = _round_up(bp8, tb)
    return bp, tb


def _pad_batch(x, bp):
    b = x.shape[0]
    if bp == b:
        return x
    return jnp.pad(x, ((0, bp - b), (0, 0)))


def packed_projection(x, w_packed, b_packed):
    """One fused pallas_call: (B,Fin) @ (Fin,Np) + (Np,) -> (B,Np) f32."""
    batch, fin = x.shape
    np_ = w_packed.shape[1]
    bp, tb = _batch_tiling(batch)

    xb = _pad_batch(x, bp).astype(jnp.bfloat16)
    wb = w_packed.astype(jnp.bfloat16)
    b2 = b_packed.reshape(1, np_).astype(jnp.float32)

    flops = 2 * bp * fin * np_
    bytes_accessed = xb.size * 2 + wb.size * 2 + b2.size * 4 + bp * np_ * 4

    out = pl.pallas_call(
        _packed_linear_kernel,
        out_shape=jax.ShapeDtypeStruct((bp, np_), jnp.float32),
        grid_spec=pltpu.PrefetchScalarGridSpec(
            num_scalar_prefetch=0,
            grid=(bp // tb,),
            in_specs=[
                pl.BlockSpec((tb, fin), lambda i: (i, 0)),
                pl.BlockSpec((fin, np_), lambda i: (0, 0)),   # grid-invariant W
                pl.BlockSpec((1, np_), lambda i: (0, 0)),     # grid-invariant b
            ],
            out_specs=pl.BlockSpec((tb, np_), lambda i: (i, 0)),
        ),
        compiler_params=pltpu.CompilerParams(
            dimension_semantics=("parallel",),
            vmem_limit_bytes=32 * 1024 * 1024,
        ),
        cost_estimate=pl.CostEstimate(
            flops=flops, transcendentals=0, bytes_accessed=bytes_accessed),
    )(xb, wb, b2)
    return out[:batch]


def two_layer_projection(x, w1_s, b1_s, w2_s, b2_s):
    """Stacked-domain fused two-layer projection.
    w1_s:(D,Fin,Fin), b1_s:(D,1,Fin), w2_s:(D,Fin,Op), b2_s:(D,1,Op).
    Returns (D, B, Op) f32."""
    batch, fin = x.shape
    d = w1_s.shape[0]
    op = w2_s.shape[2]
    bp, tb = _batch_tiling(batch)

    xb = _pad_batch(x, bp).astype(jnp.bfloat16)
    w1b = w1_s.astype(jnp.bfloat16)
    w2b = w2_s.astype(jnp.bfloat16)
    b1f = b1_s.astype(jnp.float32)
    b2f = b2_s.astype(jnp.float32)

    flops = 2 * d * bp * fin * (fin + op)
    bytes_accessed = (xb.size * 2 + w1b.size * 2 + w2b.size * 2
                      + b1f.size * 4 + b2f.size * 4 + d * bp * op * 4)

    out = pl.pallas_call(
        _two_layer_kernel,
        out_shape=jax.ShapeDtypeStruct((d, bp, op), jnp.float32),
        grid_spec=pltpu.PrefetchScalarGridSpec(
            num_scalar_prefetch=0,
            grid=(d, bp // tb),
            in_specs=[
                pl.BlockSpec((tb, fin), lambda dd, i: (i, 0)),
                pl.BlockSpec((None, fin, fin), lambda dd, i: (dd, 0, 0)),
                pl.BlockSpec((None, 1, fin), lambda dd, i: (dd, 0, 0)),
                pl.BlockSpec((None, fin, op), lambda dd, i: (dd, 0, 0)),
                pl.BlockSpec((None, 1, op), lambda dd, i: (dd, 0, 0)),
            ],
            out_specs=pl.BlockSpec((None, tb, op), lambda dd, i: (dd, i, 0)),
        ),
        compiler_params=pltpu.CompilerParams(
            dimension_semantics=("parallel", "parallel"),
            vmem_limit_bytes=32 * 1024 * 1024,
        ),
        cost_estimate=pl.CostEstimate(
            flops=flops, transcendentals=d * bp * fin,
            bytes_accessed=bytes_accessed),
    )(xb, w1b, b1f, w2b, b2f)
    return out[:, :batch, :]


# ---------------------------------------------------------------------------
# MultiDomainProjection (parameters built deterministically in-script)
# ---------------------------------------------------------------------------
class MultiDomainProjection:
    def __init__(
        self,
        domain_to_num_labels,
        out_dims_for_each_domain,
        in_features=512,
        num_domains=3,
        use_two_layer_on_projection=False,
        seed=0,
    ):
        self.num_domains = num_domains
        self.domain_to_num_labels = domain_to_num_labels
        self.in_features = in_features
        self.use_two_layer = use_two_layer_on_projection
        self.params = {}  # per-domain original-shape params (for reference checks)

        key = jax.random.PRNGKey(seed)
        for domain_name, num_labels in domain_to_num_labels.items():
            if num_labels == 1:
                # same skip rule as the PyTorch module
                continue
            out_dim = out_dims_for_each_domain[domain_name]
            key, k1, k2, k3, k4 = jax.random.split(key, 5)
            if use_two_layer_on_projection:
                w1 = jax.random.normal(k1, (in_features, in_features), jnp.float32) * 0.02
                b1 = jax.random.normal(k2, (in_features,), jnp.float32) * 0.02
                w2 = jax.random.normal(k3, (in_features, out_dim), jnp.float32) * 0.02
                b2 = jax.random.normal(k4, (out_dim,), jnp.float32) * 0.02
                self.params[domain_name] = (w1, b1, w2, b2)
            else:
                w = jax.random.normal(k1, (in_features, out_dim), jnp.float32) * 0.02
                b = jax.random.normal(k2, (out_dim,), jnp.float32) * 0.02
                self.params[domain_name] = (w, b)

        self.active_domains = list(self.params.keys())
        self.out_dims = {n: out_dims_for_each_domain[n] for n in self.active_domains}
        self._build_packed_params()

    def _build_packed_params(self):
        if not self.active_domains:
            return
        fin = self.in_features
        if self.use_two_layer:
            # stack along a leading domain axis; pad out_dim to a common,
            # 128-lane-aligned width so output stores are lane dense.
            op = _round_up(max(self.out_dims.values()), 128)
            w1s, b1s, w2s, b2s = [], [], [], []
            for name in self.active_domains:
                w1, b1, w2, b2 = self.params[name]
                od = self.out_dims[name]
                w1s.append(w1)
                b1s.append(b1.reshape(1, fin))
                w2s.append(jnp.pad(w2, ((0, 0), (0, op - od))))
                b2s.append(jnp.pad(b2, (0, op - od)).reshape(1, op))
            self.w1_stacked = jnp.stack(w1s)    # (D, Fin, Fin)
            self.b1_stacked = jnp.stack(b1s)    # (D, 1, Fin)
            self.w2_stacked = jnp.stack(w2s)    # (D, Fin, Op)
            self.b2_stacked = jnp.stack(b2s)    # (D, 1, Op)
            self.out_pad = op
        else:
            # pack every domain projector column-wise into ONE weight; pad the
            # packed width to a multiple of 128 lanes.
            offsets, off = {}, 0
            for name in self.active_domains:
                offsets[name] = off
                off += self.out_dims[name]
            np_ = _round_up(off, 128)
            w_packed = jnp.zeros((fin, np_), jnp.float32)
            b_packed = jnp.zeros((np_,), jnp.float32)
            for name in self.active_domains:
                w, b = self.params[name]
                o, od = offsets[name], self.out_dims[name]
                w_packed = w_packed.at[:, o:o + od].set(w)
                b_packed = b_packed.at[o:o + od].set(b)
            self.w_packed = w_packed
            self.b_packed = b_packed
            self.col_offsets = offsets

    def __call__(self, x):
        domain_logits = {}
        if not self.active_domains:
            return domain_logits
        if self.use_two_layer:
            out = two_layer_projection(
                x, self.w1_stacked, self.b1_stacked,
                self.w2_stacked, self.b2_stacked)            # (D, B, Op)
            for i, name in enumerate(self.active_domains):
                domain_logits[name] = out[i, :, :self.out_dims[name]]
        else:
            out = packed_projection(x, self.w_packed, self.b_packed)  # (B, Np)
            for name in self.active_domains:
                o = self.col_offsets[name]
                domain_logits[name] = out[:, o:o + self.out_dims[name]]
        return domain_logits


# ---------------------------------------------------------------------------
# Demo / smoke test
# ---------------------------------------------------------------------------
if __name__ == "__main__":
    batch = 2
    in_features = 32

    domain_to_num_labels = {"products": 10, "landmarks": 6, "other": 1}  # "other" skipped
    out_dims_for_each_domain = {"products": 16, "landmarks": 8, "other": 4}

    x = jax.random.normal(jax.random.PRNGKey(0), (batch, in_features), jnp.float32)
    xb = x.astype(jnp.bfloat16).astype(jnp.float32)   # kernel uses bf16 operands

    ok = True

    # ---- single-layer configuration ----------------------------------------
    model = MultiDomainProjection(
        domain_to_num_labels, out_dims_for_each_domain,
        in_features=in_features, num_domains=3,
        use_two_layer_on_projection=False, seed=0)
    out = jax.block_until_ready(model(x))
    assert "other" not in out
    for name, (w, b) in model.params.items():
        wb = w.astype(jnp.bfloat16).astype(jnp.float32)
        ref = xb @ wb + b
        ok &= out[name].shape == (batch, out_dims_for_each_domain[name])
        ok &= bool(jnp.allclose(out[name], ref, atol=1e-4, rtol=1e-4))

    # ---- two-layer configuration --------------------------------------------
    model2 = MultiDomainProjection(
        domain_to_num_labels, out_dims_for_each_domain,
        in_features=in_features, num_domains=3,
        use_two_layer_on_projection=True, seed=0)
    out2 = jax.block_until_ready(model2(x))
    assert "other" not in out2
    for name, (w1, b1, w2, b2) in model2.params.items():
        w1b = w1.astype(jnp.bfloat16).astype(jnp.float32)
        w2b = w2.astype(jnp.bfloat16).astype(jnp.float32)
        h = jnp.tanh(xb @ w1b + b1)
        h = h.astype(jnp.bfloat16).astype(jnp.float32)
        ref = h @ w2b + b2
        ok &= out2[name].shape == (batch, out_dims_for_each_domain[name])
        ok &= bool(jnp.allclose(out2[name], ref, atol=1e-2, rtol=1e-2))

    if ok:
        print("KERNEL_OK")
</pallas_src>

<mosaic_0001>
module attributes {stable_mosaic.version = 11 : i64} {
  func.func @_packed_linear_kernel(%arg0: i32, %arg1: memref<8x32xbf16, #tpu.memory_space<vmem>>, %arg2: memref<32x128xbf16, #tpu.memory_space<vmem>>, %arg3: memref<1x128xf32, #tpu.memory_space<vmem>>, %arg4: memref<8x128xf32, #tpu.memory_space<vmem>>) attributes {dimension_semantics = [#tpu.dimension_semantics<parallel>], iteration_bounds = array<i64: 1>, scalar_prefetch = 0 : i64, scratch_operands = 0 : i64, tpu.core_type = #tpu.core_type<tc>, window_params = [{transform_indices = @transform_0, window_bounds = array<i64: 8, 32>}, {pipeline_mode = #tpu.pipeline_mode<synchronous>, transform_indices = @transform_1, window_bounds = array<i64: 32, 128>}, {pipeline_mode = #tpu.pipeline_mode<synchronous>, transform_indices = @transform_2, window_bounds = array<i64: 1, 128>}, {transform_indices = @transform_3, window_bounds = array<i64: 8, 128>}]} {
    %c0 = arith.constant 0 : index
    %c0_0 = arith.constant 0 : index
    %0 = vector.load %arg1[%c0, %c0_0] : memref<8x32xbf16, #tpu.memory_space<vmem>>, vector<8x32xbf16>
    %c0_1 = arith.constant 0 : index
    %c0_2 = arith.constant 0 : index
    %1 = vector.load %arg2[%c0_1, %c0_2] : memref<32x128xbf16, #tpu.memory_space<vmem>>, vector<32x128xbf16>
    %cst = arith.constant dense<0.000000e+00> : vector<8x128xf32>
    %2 = tpu.matmul %0, %1, %cst {dimension_numbers = #tpu.dot_dimension_numbers<[1], [0], [0], [1], [0, 0, 1, 1], [], []>} : vector<8x32xbf16>, vector<32x128xbf16>, vector<8x128xf32> -> vector<8x128xf32>
    %c0_3 = arith.constant 0 : index
    %c0_4 = arith.constant 0 : index
    %3 = vector.load %arg3[%c0_3, %c0_4] : memref<1x128xf32, #tpu.memory_space<vmem>>, vector<1x128xf32>
    %4 = vector.broadcast %3 : vector<1x128xf32> to vector<8x128xf32>
    %5 = arith.addf %2, %4 : vector<8x128xf32>
    %c0_5 = arith.constant 0 : index
    %c0_6 = arith.constant 0 : index
    %6 = vector.load %arg4[%c0_5, %c0_6] : memref<8x128xf32, #tpu.memory_space<vmem>>, vector<8x128xf32>
    tpu.vector_store %arg4[%c0_5, %c0_6], %5 {strides = array<i32>} : memref<8x128xf32, #tpu.memory_space<vmem>>, vector<8x128xf32>,
    return
  }
  func.func @transform_0(%arg0: i32) -> (i32, i32) {
    %c0_i32 = arith.constant 0 : i32
    %c0_i32_0 = arith.constant 0 : i32
    return %arg0, %c0_i32 : i32, i32
  }
  func.func @transform_1(%arg0: i32) -> (i32, i32) {
    %c0_i32 = arith.constant 0 : i32
    %c0_i32_0 = arith.constant 0 : i32
    %c0_i32_1 = arith.constant 0 : i32
    return %c0_i32, %c0_i32_0 : i32, i32
  }
  func.func @transform_2(%arg0: i32) -> (i32, i32) {
    %c0_i32 = arith.constant 0 : i32
    %c0_i32_0 = arith.constant 0 : i32
    %c0_i32_1 = arith.constant 0 : i32
    return %c0_i32, %c0_i32_0 : i32, i32
  }
  func.func @transform_3(%arg0: i32) -> (i32, i32) {
    %c0_i32 = arith.constant 0 : i32
    %c0_i32_0 = arith.constant 0 : i32
    return %arg0, %c0_i32 : i32, i32
  }
}

</mosaic_0001>

<bundles_post_ra>
// kernel: tpu_custom_call.1
= control target key start
LH: loop header
LB: loop body
LE: loop exit
PB: predicated region body
PF: predicated region fallthrough
CT: control target
= control target key end

     0   :  { %8 = vsyncpa [#allocation3], 0  ;;  %s296_s0 = inlined_call_operand.hbm [shape: bf16[8,32], index: 0, kind: input, shape index: {}]   ;;  %s297_s1 = inlined_call_operand.hbm [shape: bf16[32,128], index: 1, kind: input, shape index: {}]   ;;  %s298_s2 = inlined_call_operand.vmem [shape: f32[1,128], index: 2, kind: input, shape index: {}]   ;;  %s299_s3 = inlined_call_operand.hbm [shape: f32[8,128], index: 3, kind: output, shape index: {}]  }
   0x1   :  { %9 = vsyncpa [#allocation6], 0 }
   0x2   :  { %10 = vsyncpa [#allocation4], 0  ;;  %s223_s12 = smov [#allocation2]   ;;  %s224_s14 = smov [#allocation5]  }
   0x3   :  { %s17_s13 = sshll.u32 %s223_s12, 4  ;;  %s26_s15 = sshll.u32 %s224_s14, 4  ;;  %s18_s13 = int_to_ptr.vmem [resolvable:$true] %s17_s13  ;;  %s250_s15 = int_to_ptr.vmem [resolvable:$true] %s26_s15 }
   0x4   :  { %s151_s18 = scalar_lea.hbm %s296_s0, 64 }
   0x5   :  { %p152_p0 = scmp.ne.s32.totalorder %s296_s0, %s151_s18  ;;  %p155_p1 = scmp.lt.u32.totalorder %s151_s18, %s296_s0 }
   0x7   :  { %p157_p2 = pnand %p155_p1, %p152_p0 }
   0x9   :  { %160 = shalt.err (!%p157_p2)
}
   0xa   :  { %s161_s23 = scalar_lea.vmem %s18_s13, 64  ;;  %p166_p4 = scmp.lt.s32.totalorder %s18_s13, %s18_s13 }
   0xb   :  { %p162_p3 = scmp.ne.s32.totalorder %s18_s13, %s161_s23  ;;  %p167_p5 = scmp.lt.s32.totalorder %s161_s23, %s161_s23 }
   0xd   :  { %p168_p6 = por %p167_p5, %p166_p4 }
   0xf   :  { %p169_p7 = pnand %p168_p6, %p162_p3 }
  0x11   :  { %172 = shalt.err (!%p169_p7)
}
  0x12   :  { %20 = dma.hbm_to_vmem [thread:$0]  %s296_s0, 64, %s18_s13, [#allocation3]  }
  0x13   :  { %s173_s28 = scalar_lea.hbm %s297_s1, 256 }
  0x14   :  { %p174_p8 = scmp.ne.s32.totalorder %s297_s1, %s173_s28  ;;  %p177_p9 = scmp.lt.u32.totalorder %s173_s28, %s297_s1 }
  0x16   :  { %p179_p10 = pnand %p177_p9, %p174_p8 }
  0x18   :  { %182 = shalt.err (!%p179_p10)
}
  0x19   :  { %s183_s6 = scalar_lea.vmem %s250_s15, 256  ;;  %p188_p12 = scmp.lt.s32.totalorder %s250_s15, %s250_s15 }
  0x1a   :  { %p184_p11 = scmp.ne.s32.totalorder %s250_s15, %s183_s6  ;;  %p189_p13 = scmp.lt.s32.totalorder %s183_s6, %s183_s6 }
  0x1c   :  { %p190_p0 = por %p189_p13, %p188_p12 }
  0x1e   :  { %p191_p1 = pnand %p190_p0, %p184_p11 }
  0x20   :  { %194 = shalt.err (!%p191_p1)
}
  0x21   :  { %s225_s0 = smov 64   ;;  %s226_s7 = smov 4  }
  0x22   :  { %32 = dma.hbm_to_vmem [thread:$0]  %s297_s1, 256, %s250_s15, [#allocation6], %s225_s0, %s225_s0, %s226_s7  }
  0x23   :  { %217 = dma.done.wait [#allocation3], 64  }
  0x24   :  { %218 = vsyncadd [#allocation3], 4294967232 }
  0x25   :  { %219 = dma.done.wait [#allocation6], 256  }
  0x26   :  { %220 = vsyncadd [#allocation6], 4294967040  ;;  %v227_v0 = vmov 0.0   ;;  %vm228_vm0 = vmmov 0   ;;  %v149_v1 = vld [vmem:[#allocation5] sm:$0xff]   ;;  %v150_v2 = vld [vmem:[#allocation5 + $0x8] sm:$0xff]  }
  0x27   :  { %134 = vmatprep.subr.bf16.mxu0 %v227_v0  ;;  %138 = vmatprep.mubr.msk.bf16.mxu0 %vm228_vm0, %v227_v0  ;;  %v42_v3 = vld [vmem:[#allocation2] sm:$0xf]  ;;  %vm66_vm1 = vcmask 261120   ;;  %s229_s1 = smov [#allocation7]  }
  0x28   :  { %135 = vmatpush3.bf16.msra.mxu0 %v149_v1  ;;  %v127_v4 = vld [vmem:[%s298_s2] ss:$0 sm:$0xff]  ;;  %s117_s12 = sshll.u32 %s229_s1, 4  ;;  %s118_s12 = int_to_ptr.vmem [resolvable:$true] %s117_s12 }
  0x29   :  { %136 = vmatprep.subr.bf16.mxu0 %v227_v0  ;;  %s195_s13 = scalar_lea.vmem %s118_s12, 128  ;;  %p200_p3 = scmp.lt.s32.totalorder %s118_s12, %s118_s12 }
  0x2a   :  { %p196_p2 = scmp.ne.s32.totalorder %s118_s12, %s195_s13  ;;  %p201_p4 = scmp.lt.s32.totalorder %s195_s13, %s195_s13 }
  0x2c   :  { %137 = vmatpush3.bf16.msra.mxu0 %v150_v2  ;;  %p202_p5 = por %p201_p4, %p200_p3 }
  0x2e   :  { %p203_p6 = pnand %p202_p5, %p196_p2 }
  0x2f   :  { %139 = vmatmul.mubr.msk.bf16.vlgmr.msra.gmra.mrb[0].mxu0 %vm66_vm1, %v42_v3 }
 0x102   :  { %v104_v5 = vpop.f32.mrb[0].mxu0 }
 0x103   :  { %v105_v6 = vadd.f32 %v127_v4, %v104_v5  ;;  %v140_v7 = vpop.f32.mrb[1].mxu0 }
 0x104   :  { %v107_v8 = vpop.f32.mrb[2].mxu0 }
 0x105   :  { %110 = vst [vmem:[#allocation7] sm:$0xff] %v105_v6  ;;  %v141_v9 = vpop.f32.mrb[3].mxu0 }
 0x106   :  { %206 = shalt.err (!%p203_p6)
}
 0x107   :  { %s207_s2 = scalar_lea.hbm %s299_s3, 128 }
 0x108   :  { %p208_p7 = scmp.ne.s32.totalorder %s299_s3, %s207_s2  ;;  %p211_p8 = scmp.lt.u32.totalorder %s207_s2, %s299_s3 }
 0x10a   :  { %p213_p9 = pnand %p211_p8, %p208_p7 }
 0x10c   :  { %216 = shalt.err (!%p213_p9)
}
 0x10d   :  { %120 = dma.vmem_to_hbm [thread:$0]  %s118_s12, 128, %s299_s3, [#allocation4]  }
 0x10e   :  { %221 = dma.done.wait [#allocation4], 128  }
 0x10f   :  { %222 = vsyncadd [#allocation4], 4294967168 }
 0x110   :  { %124 = vsyncpa [#allocation3], 1 }
 0x111   :  { %125 = vsyncpa [#allocation6], 1 }
 0x112   :  { %126 = vsyncpa [#allocation4], 1 }

</bundles_post_ra>
